<compile_context>
chip_gen: v5e
topology: v5e:2x2
jax: 0.10.0
libtpu: 0.0.40
codegen_flags: <defaults>
</compile_context>

<pallas_src>
import math
from functools import lru_cache, partial

import jax
import jax.numpy as jnp
import numpy as np
from jax.experimental import pallas as pl
from jax.experimental.pallas import tpu as pltpu


def _round_up(x, m):
    return (x + m - 1) // m * m


@lru_cache(maxsize=1)
def _vmem_limit_bytes():
    """Per-generation scoped-VMEM limit: ~3/4 of physical capacity
    (96 MiB on v5e/v6e's 128 MiB, 48 MiB on v7x's 64 MiB)."""
    cap = 64 * 1024 * 1024
    try:
        info = pltpu.get_tpu_info()
        cap = int(getattr(info, "vmem_capacity_bytes", cap) or cap)
    except Exception:
        pass
    return (cap * 3) // 4


def _pick_tile(dim, target, align):
    """Largest multiple of `align` <= target that evenly divides `dim`;
    falls back to the full dimension (always legal / correct)."""
    if dim <= target:
        return dim
    t = (target // align) * align
    while t >= align:
        if dim % t == 0:
            return t
        t -= align
    # TODO(synk): masked tail blocks for prime-ish K/N instead of full-dim tile.
    return dim


# ---------------------------------------------------------------------------
# Tiled linear:  y = x @ w + b   (bf16 MXU operands, f32 accumulation)
# ---------------------------------------------------------------------------
def _linear_kernel(x_ref, w_ref, b_ref, o_ref, acc_ref):
    k = pl.program_id(2)

    @pl.when(k == 0)
    def _():
        acc_ref[...] = jnp.zeros_like(acc_ref)

    acc_ref[...] += jnp.dot(x_ref[...].astype(jnp.bfloat16),
                            w_ref[...].astype(jnp.bfloat16),
                            preferred_element_type=jnp.float32)

    @pl.when(k == pl.num_programs(2) - 1)
    def _():
        o_ref[...] = (acc_ref[...] + b_ref[...]).astype(o_ref.dtype)


def pallas_linear(x, w, b, *, tm_target=512, tn_target=512, tk_target=1024):
    """y = x @ w + b   with x:(M,K), w:(K,N), b:(N,)."""
    M, K = x.shape
    N = w.shape[1]

    # Row (M) axis: pad to an aligned tile so an awkward M never degenerates
    # the grid to one huge block; padded rows are sliced off below.
    tm = min(tm_target, _round_up(M, 8))
    Mp = _round_up(M, tm)
    if Mp != M:
        x = jnp.pad(x, ((0, Mp - M), (0, 0)))
    tn = _pick_tile(N, tn_target, 128)   # lane / MXU-aligned
    tk = _pick_tile(K, tk_target, 128)   # lane / MXU-aligned
    grid = (Mp // tm, N // tn, K // tk)

    itemsize = jnp.dtype(x.dtype).itemsize
    cost = pl.CostEstimate(
        flops=2 * Mp * K * N,
        transcendentals=0,
        bytes_accessed=(Mp * K + K * N + Mp * N + N) * itemsize,
    )

    out = pl.pallas_call(
        _linear_kernel,
        out_shape=jax.ShapeDtypeStruct((Mp, N), x.dtype),
        grid=grid,
        in_specs=[
            pl.BlockSpec((tm, tk), lambda i, j, k: (i, k)),
            pl.BlockSpec((tk, tn), lambda i, j, k: (k, j)),
            pl.BlockSpec((1, tn), lambda i, j, k: (0, j)),
        ],
        out_specs=pl.BlockSpec((tm, tn), lambda i, j, k: (i, j)),
        scratch_shapes=[pltpu.VMEM((tm, tn), jnp.float32)],
        compiler_params=pltpu.CompilerParams(
            dimension_semantics=("parallel", "parallel", "arbitrary"),
            vmem_limit_bytes=_vmem_limit_bytes(),
        ),
        cost_estimate=cost,
    )(x, w, b.reshape(1, N))
    return out[:M] if Mp != M else out


# ---------------------------------------------------------------------------
# Fused attention + output projection, gridded over (batch, Sq tiles)
# ---------------------------------------------------------------------------
def _attend_outproj_kernel(q_ref, kv_ref, wo_ref, bo_ref, o_ref, acc_ref,
                           *, n_heads, head_dim):
    # q_ref  : (tq, D)        query-projection tile for this (batch, q-block)
    # kv_ref : (Sk, 2*D)      fused key/value projection (K half | V half)
    # wo_ref : (D, D), bo_ref: (1, D)
    # o_ref  : (tq, D)        final output (lane-dense last dim)
    # acc_ref: (tq, D) f32 VMEM accumulator / head-merge scratch
    dk = head_dim
    D = n_heads * dk
    scale = 1.0 / math.sqrt(dk)
    per_head_proj = dk % 128 != 0      # dk < 128: avoid masked sub-128 stores

    if per_head_proj:
        acc_ref[...] = jnp.zeros_like(acc_ref)

    for h in range(n_heads):  # head split via static in-VMEM slices
        q = q_ref[:, h * dk:(h + 1) * dk].astype(jnp.bfloat16)          # (tq, dk)
        k = kv_ref[:, h * dk:(h + 1) * dk].astype(jnp.bfloat16)         # (Sk, dk)
        v = kv_ref[:, D + h * dk:D + (h + 1) * dk].astype(jnp.bfloat16)  # (Sk, dk)

        # scores: contract last dims directly (no k.T transpose), f32 acc
        s = jax.lax.dot_general(
            q, k, dimension_numbers=(((1,), (1,)), ((), ())),
            preferred_element_type=jnp.float32) * scale                  # (tq, Sk)

        # numerically-stable softmax, f32 elementwise math
        s = s - jnp.max(s, axis=-1, keepdims=True)
        p = jnp.exp(s)
        p = p * pl.reciprocal(jnp.sum(p, axis=-1, keepdims=True), approx=True)

        pv = jnp.dot(p.astype(jnp.bfloat16), v,
                     preferred_element_type=jnp.float32)                 # (tq, dk)

        if per_head_proj:
            # fold the output projection in per head: lane-dense accumulate,
            # no narrow (dk-wide) stores anywhere.
            wo_h = wo_ref[h * dk:(h + 1) * dk, :].astype(jnp.bfloat16)   # (dk, D)
            acc_ref[...] += jnp.dot(pv.astype(jnp.bfloat16), wo_h,
                                    preferred_element_type=jnp.float32)
        else:
            # dk is a multiple of 128: stores are lane-aligned; keep the
            # out-projection contraction at full depth D.
            acc_ref[:, h * dk:(h + 1) * dk] = pv

    if per_head_proj:
        o_ref[...] = (acc_ref[...] + bo_ref[...]).astype(o_ref.dtype)
    else:
        o_ref[...] = (jnp.dot(acc_ref[...].astype(jnp.bfloat16),
                              wo_ref[...].astype(jnp.bfloat16),
                              preferred_element_type=jnp.float32)
                      + bo_ref[...]).astype(o_ref.dtype)


def pallas_attend_out(q, kv, wo, bo, n_heads, *, tq_target=256):
    """q:(B,Sq,D), kv:(B,Sk,2D) -> (B,Sq,D) = out_proj(softmax(qk^T/sqrt(dk)) v)."""
    B, Sq, D = q.shape
    Sk = kv.shape[1]
    dk = D // n_heads

    tq = _pick_tile(Sq, tq_target, 8)
    grid = (B, Sq // tq)
    kernel = partial(_attend_outproj_kernel, n_heads=n_heads, head_dim=dk)

    itemsize = jnp.dtype(q.dtype).itemsize
    cost = pl.CostEstimate(
        flops=B * (4 * Sq * Sk * D + 2 * Sq * D * D),
        transcendentals=B * n_heads * Sq * Sk,
        bytes_accessed=(2 * B * Sq * D + 2 * B * Sk * D + D * D + D) * itemsize,
    )

    return pl.pallas_call(
        kernel,
        out_shape=jax.ShapeDtypeStruct((B, Sq, D), q.dtype),
        grid=grid,
        in_specs=[
            pl.BlockSpec((None, tq, D), lambda b, i: (b, i, 0)),
            pl.BlockSpec((None, Sk, 2 * D), lambda b, i: (b, 0, 0)),
            pl.BlockSpec((D, D), lambda b, i: (0, 0)),
            pl.BlockSpec((1, D), lambda b, i: (0, 0)),
        ],
        out_specs=pl.BlockSpec((None, tq, D), lambda b, i: (b, i, 0)),
        scratch_shapes=[pltpu.VMEM((tq, D), jnp.float32)],
        compiler_params=pltpu.CompilerParams(
            dimension_semantics=("parallel", "parallel"),
            vmem_limit_bytes=_vmem_limit_bytes(),
        ),
        cost_estimate=cost,
    )(q, kv, wo, bo.reshape(1, D))


# ---------------------------------------------------------------------------
# CrossAttention2D forward
# ---------------------------------------------------------------------------
def init_params(key, n_heads, model_dim, context_dim):
    assert model_dim % n_heads == 0
    ks = jax.random.split(key, 6)
    s = 0.02
    return {
        # stored directly in (in, out) layout == torch W.T
        "wq": jax.random.normal(ks[0], (model_dim, model_dim), jnp.float32) * s,
        "bq": jax.random.normal(ks[1], (model_dim,), jnp.float32) * s,
        "wkv": jax.random.normal(ks[2], (context_dim, 2 * model_dim), jnp.float32) * s,
        "bkv": jax.random.normal(ks[3], (2 * model_dim,), jnp.float32) * s,
        "wo": jax.random.normal(ks[4], (model_dim, model_dim), jnp.float32) * s,
        "bo": jax.random.normal(ks[5], (model_dim,), jnp.float32) * s,
    }


def cross_attention_2d(x, context, params, n_heads):
    B, Sq, D = x.shape
    _, Sk, Dc = context.shape

    # forward_in: projections (tiled Pallas matmuls); reshapes below are
    # contiguous (free) -- no HBM transposes anywhere in the pipeline.
    q = pallas_linear(x.reshape(B * Sq, D),
                      params["wq"], params["bq"]).reshape(B, Sq, D)
    kv = pallas_linear(context.reshape(B * Sk, Dc),
                       params["wkv"], params["bkv"]).reshape(B, Sk, 2 * D)

    # fused: head split + ScaleAttend + head merge + linear_out
    return pallas_attend_out(q, kv, params["wo"], params["bo"], n_heads)


# pure-JAX (f32) reference for sanity check
def reference(x, context, params, n_heads):
    B, Sq, D = x.shape
    _, Sk, Dc = context.shape
    dk = D // n_heads
    q = x @ params["wq"] + params["bq"]
    kv = context @ params["wkv"] + params["bkv"]
    k, v = kv[..., :D], kv[..., D:]

    def vi(t, S):
        return t.reshape(B, S, n_heads, dk).transpose(0, 2, 1, 3)

    qh, kh, vh = vi(q, Sq), vi(k, Sk), vi(v, Sk)
    s = jnp.einsum("bnqd,bnkd->bnqk", qh, kh) / math.sqrt(dk)
    p = jax.nn.softmax(s, axis=-1)
    oh = jnp.einsum("bnqk,bnkd->bnqd", p, vh)
    o = oh.transpose(0, 2, 1, 3).reshape(B, Sq, D)
    return o @ params["wo"] + params["bo"]


if __name__ == "__main__":
    B, Sq, Sk = 2, 8, 16
    n_heads, model_dim, context_dim = 4, 32, 48

    key = jax.random.PRNGKey(0)
    kx, kc, kp = jax.random.split(key, 3)
    x = jax.random.normal(kx, (B, Sq, model_dim), jnp.float32)
    context = jax.random.normal(kc, (B, Sk, context_dim), jnp.float32)
    params = init_params(kp, n_heads, model_dim, context_dim)

    out = cross_attention_2d(x, context, params, n_heads)
    out = jax.block_until_ready(out)

    ref = reference(x, context, params, n_heads)
    # tolerance relaxed vs an all-f32 pipeline: MXU operands are bf16 (f32
    # accumulation) and the softmax denominator uses the approximate EUP
    # reciprocal; the f32 reference therefore differs at the ~1e-3 level.
    np.testing.assert_allclose(np.asarray(out), np.asarray(ref),
                               atol=1e-2, rtol=5e-2)

    print("KERNEL_OK")
</pallas_src>

<mosaic_0001>
module attributes {stable_mosaic.version = 11 : i64} {
  func.func @_linear_kernel(%arg0: i32, %arg1: i32, %arg2: i32, %arg3: memref<16x32xf32, #tpu.memory_space<vmem>>, %arg4: memref<32x32xf32, #tpu.memory_space<vmem>>, %arg5: memref<1x32xf32, #tpu.memory_space<vmem>>, %arg6: memref<16x32xf32, #tpu.memory_space<vmem>>, %arg7: memref<16x32xf32, #tpu.memory_space<vmem>>) attributes {dimension_semantics = [#tpu.dimension_semantics<parallel>, #tpu.dimension_semantics<parallel>, #tpu.dimension_semantics<arbitrary>], iteration_bounds = array<i64: 1, 1, 1>, scalar_prefetch = 0 : i64, scratch_operands = 1 : i64, tpu.core_type = #tpu.core_type<tc>, window_params = [{transform_indices = @transform_0, window_bounds = array<i64: 16, 32>}, {transform_indices = @transform_1, window_bounds = array<i64: 32, 32>}, {transform_indices = @transform_2, window_bounds = array<i64: 1, 32>}, {transform_indices = @transform_3, window_bounds = array<i64: 16, 32>}]} {
    %c0_i32 = arith.constant 0 : i32
    %0 = arith.cmpi eq, %arg2, %c0_i32 : i32
    %1 = arith.extui %0 : i1 to i32
    %c0_i32_0 = arith.constant 0 : i32
    %2 = arith.cmpi ne, %1, %c0_i32_0 : i32
    scf.if %2 {
      %cst_10 = arith.constant 0.000000e+00 : f32
      %14 = vector.broadcast %cst_10 : f32 to vector<16x32xf32>
      %c0_11 = arith.constant 0 : index
      %c0_12 = arith.constant 0 : index
      %15 = vector.load %arg7[%c0_11, %c0_12] : memref<16x32xf32, #tpu.memory_space<vmem>>, vector<16x32xf32>
      tpu.vector_store %arg7[%c0_11, %c0_12], %14 {strides = array<i32>} : memref<16x32xf32, #tpu.memory_space<vmem>>, vector<16x32xf32>,
    } else {
    }
    %c0 = arith.constant 0 : index
    %c0_1 = arith.constant 0 : index
    %3 = vector.load %arg7[%c0, %c0_1] : memref<16x32xf32, #tpu.memory_space<vmem>>, vector<16x32xf32>
    %c0_2 = arith.constant 0 : index
    %c0_3 = arith.constant 0 : index
    %4 = vector.load %arg3[%c0_2, %c0_3] : memref<16x32xf32, #tpu.memory_space<vmem>>, vector<16x32xf32>
    %5 = arith.truncf %4 : vector<16x32xf32> to vector<16x32xbf16>
    %c0_4 = arith.constant 0 : index
    %c0_5 = arith.constant 0 : index
    %6 = vector.load %arg4[%c0_4, %c0_5] : memref<32x32xf32, #tpu.memory_space<vmem>>, vector<32x32xf32>
    %7 = arith.truncf %6 : vector<32x32xf32> to vector<32x32xbf16>
    %cst = arith.constant dense<0.000000e+00> : vector<16x32xf32>
    %8 = tpu.matmul %5, %7, %cst {dimension_numbers = #tpu.dot_dimension_numbers<[1], [0], [0], [1], [0, 0, 1, 1], [], []>} : vector<16x32xbf16>, vector<32x32xbf16>, vector<16x32xf32> -> vector<16x32xf32>
    %9 = arith.addf %3, %8 : vector<16x32xf32>
    %c0_6 = arith.constant 0 : index
    %c0_7 = arith.constant 0 : index
    %10 = vector.load %arg7[%c0_6, %c0_7] : memref<16x32xf32, #tpu.memory_space<vmem>>, vector<16x32xf32>
    tpu.vector_store %arg7[%c0_6, %c0_7], %9 {strides = array<i32>} : memref<16x32xf32, #tpu.memory_space<vmem>>, vector<16x32xf32>,
    %c0_i32_8 = arith.constant 0 : i32
    %11 = arith.cmpi eq, %arg2, %c0_i32_8 : i32
    %12 = arith.extui %11 : i1 to i32
    %c0_i32_9 = arith.constant 0 : i32
    %13 = arith.cmpi ne, %12, %c0_i32_9 : i32
    scf.if %13 {
      %c0_10 = arith.constant 0 : index
      %c0_11 = arith.constant 0 : index
      %14 = vector.load %arg7[%c0_10, %c0_11] : memref<16x32xf32, #tpu.memory_space<vmem>>, vector<16x32xf32>
      %c0_12 = arith.constant 0 : index
      %c0_13 = arith.constant 0 : index
      %15 = vector.load %arg5[%c0_12, %c0_13] : memref<1x32xf32, #tpu.memory_space<vmem>>, vector<1x32xf32>
      %16 = vector.broadcast %15 : vector<1x32xf32> to vector<16x32xf32>
      %17 = arith.addf %14, %16 : vector<16x32xf32>
      %c0_14 = arith.constant 0 : index
      %c0_15 = arith.constant 0 : index
      %18 = vector.load %arg6[%c0_14, %c0_15] : memref<16x32xf32, #tpu.memory_space<vmem>>, vector<16x32xf32>
      tpu.vector_store %arg6[%c0_14, %c0_15], %17 {strides = array<i32>} : memref<16x32xf32, #tpu.memory_space<vmem>>, vector<16x32xf32>,
    } else {
    }
    return
  }
  func.func @transform_0(%arg0: i32, %arg1: i32, %arg2: i32) -> (i32, i32) {
    %c0_i32 = arith.constant 0 : i32
    return %arg0, %arg2 : i32, i32
  }
  func.func @transform_1(%arg0: i32, %arg1: i32, %arg2: i32) -> (i32, i32) {
    %c0_i32 = arith.constant 0 : i32
    return %arg2, %arg1 : i32, i32
  }
  func.func @transform_2(%arg0: i32, %arg1: i32, %arg2: i32) -> (i32, i32) {
    %c0_i32 = arith.constant 0 : i32
    %c0_i32_0 = arith.constant 0 : i32
    return %c0_i32, %arg1 : i32, i32
  }
  func.func @transform_3(%arg0: i32, %arg1: i32, %arg2: i32) -> (i32, i32) {
    %c0_i32 = arith.constant 0 : i32
    return %arg0, %arg1 : i32, i32
  }
}

</mosaic_0001>

<bundles_post_ra>
// kernel: tpu_custom_call.1
= control target key start
LH: loop header
LB: loop body
LE: loop exit
PB: predicated region body
PF: predicated region fallthrough
CT: control target
= control target key end

     0   :  { %8 = vsyncpa [#allocation4], 0  ;;  %s261_s0 = inlined_call_operand.hbm [shape: f32[16,32], index: 0, kind: input, shape index: {}]   ;;  %s262_s1 = inlined_call_operand.hbm [shape: f32[32,32], index: 1, kind: input, shape index: {}]   ;;  %s263_s2 = inlined_call_operand.vmem [shape: f32[1,32], index: 2, kind: input, shape index: {}]   ;;  %s264_s3 = inlined_call_operand.hbm [shape: f32[16,32], index: 3, kind: output, shape index: {}]  }
   0x1   :  { %9 = vsyncpa [#allocation7], 0 }
   0x2   :  { %10 = vsyncpa [#allocation5], 0  ;;  %s15_s14 = sshll.u32 %s261_s0, 4  ;;  %s207_s15 = smov [#allocation3]   ;;  %s16_s14 = int_to_ptr.hbm [resolvable:$true] %s15_s14 }
   0x3   :  { %s17_s16 = sshll.u32 %s207_s15, 4  ;;  %s28_s19 = sshll.u32 %s262_s1, 4  ;;  %s18_s16 = int_to_ptr.vmem [resolvable:$true] %s17_s16  ;;  %s29_s19 = int_to_ptr.hbm [resolvable:$true] %s28_s19 }
   0x4   :  { %s208_s20 = smov 128   ;;  %s209_s21 = smov 8  }
   0x5   :  { %23 = dma.hbm_to_vmem [thread:$0]  %s16_s14, 256, %s18_s16, [#allocation4], %s208_s20, %s208_s20, %s209_s21  }
   0x6   :  { %s210_s22 = smov [#allocation6]  }
   0x7   :  { %s30_s23 = sshll.u32 %s210_s22, 4  ;;  %s31_s23 = int_to_ptr.vmem [resolvable:$true] %s30_s23 }
   0x8   :  { %36 = dma.hbm_to_vmem [thread:$0]  %s29_s19, 512, %s31_s23, [#allocation7], %s208_s20, %s208_s20, %s209_s21  }
   0x9   :  { %201 = dma.done.wait [#allocation4], 256  }
   0xa   :  { %202 = vsyncadd [#allocation4], 4294967040 }
   0xb   :  { %203 = dma.done.wait [#allocation7], 512  }
   0xc   :  { %204 = vsyncadd [#allocation7], 4294966784  ;;  %vm52_vm0 = vcmask 261120   ;;  %v211_v0 = vmov 0.0   ;;  %v62_v1 = vld [vmem:[#allocation6 + $0x10] sm:$0xff]  ;;  %v63_v2 = vld [vmem:[#allocation6 + $0x18] sm:$0xff] }
   0xd   :  { %53 = vst.msk [vmem:[#allocation2] sm:$0xff] %vm52_vm0, %v211_v0  ;;  %v60_v3 = vld [vmem:[#allocation6] sm:$0xff]  ;;  %v65_v4 = vpack.c.bf16 %v63_v2, %v62_v1  ;;  %v61_v5 = vld [vmem:[#allocation6 + $0x8] sm:$0xff]  ;;  %v57_v7 = vld [vmem:[#allocation3] sm:$0xff]  ;;  %s212_s24 = smov [#allocation8]   ;;  %s107_s28 = sshll.u32 %s264_s3, 4  ;;  %s108_s28 = int_to_ptr.hbm [resolvable:$true] %s107_s28 }
   0xe   :  { %54 = vst.msk [vmem:[#allocation2 + $0x8] sm:$0xff] %vm52_vm0, %v211_v0  ;;  %v64_v6 = vpack.c.bf16 %v61_v5, %v60_v3  ;;  %v58_v8 = vld [vmem:[#allocation3 + $0x8] sm:$0xff]  ;;  %v128_v14 = vld [vmem:[%s263_s2] ss:$0 sm:$0xff]  ;;  %s105_s25 = sshll.u32 %s212_s24, 4  ;;  %s106_s25 = int_to_ptr.vmem [resolvable:$true] %s105_s25 }
   0xf   :  { %76 = vmatpush.bf16.msra.mxu0 %v65_v4  ;;  %v59_v9 = vpack.c.bf16 %v58_v8, %v57_v7 }
  0x13   :  { %77 = vmatpush.bf16.msra.mxu0 %v64_v6 }
  0x14   :  { %v55_v10 = vld [vmem:[#allocation2] sm:$0xff] }
  0x15   :  { %v56_v13 = vld [vmem:[#allocation2 + $0x8] sm:$0xff] }
  0x16   :  { %121 = vmatmul.msk.bf16.vlgmr.msra.gmra.mxu0 %vm52_vm0, %v59_v9 }
  0x93   :  { %v79_v11 = vpop.f32.mrf.mxu0 }
  0x94   :  { %v84_v12 = vadd.f32 %v79_v11, %v55_v10 }
  0x96   :  { %86 = vst.msk [vmem:[#allocation2] sm:$0xff] %vm52_vm0, %v84_v12 }
  0x9b   :  { %v81_v15 = vpop.f32.mrf.mxu0 }
  0x9c   :  { %v85_v16 = vadd.f32 %v81_v15, %v56_v13 }
  0x9d   :  { %v91_v17 = vld [vmem:[#allocation2] sm:$0xff] }
  0x9e   :  { %87 = vst.msk [vmem:[#allocation2 + $0x8] sm:$0xff] %vm52_vm0, %v85_v16  ;;  %v97_v18 = vadd.f32 %v128_v14, %v91_v17 }
  0xa0   :  { %99 = vst.msk [vmem:[#allocation8] sm:$0xff] %vm52_vm0, %v97_v18 }
  0xa5   :  { %v92_v19 = vld [vmem:[#allocation2 + $0x8] sm:$0xff] }
  0xa6   :  { %v98_v20 = vadd.f32 %v128_v14, %v92_v19 }
  0xa8   :  { %100 = vst.msk [vmem:[#allocation8 + $0x8] sm:$0xff] %vm52_vm0, %v98_v20 }
  0xa9   :  { %113 = dma.vmem_to_hbm [thread:$0]  %s106_s25, 256, %s108_s28, [#allocation5], %s208_s20, %s208_s20, %s209_s21  }
  0xaa   :  { %205 = dma.done.wait [#allocation5], 256  }
  0xab   :  { %206 = vsyncadd [#allocation5], 4294967040 }
  0xac   :  { %118 = vsyncpa [#allocation4], 1 }
  0xad   :  { %119 = vsyncpa [#allocation7], 1 }
  0xae   :  { %120 = vsyncpa [#allocation5], 1 }

</bundles_post_ra>
